<compile_context>
chip_gen: v7x
topology: tpu7x:2x2x1
jax: 0.10.0
libtpu: 0.0.40
codegen_flags: <defaults>
</compile_context>

<pallas_src>
import jax
import jax.numpy as jnp
from jax.experimental import pallas as pl
from jax.experimental.pallas import tpu as pltpu


def _pwff_kernel(x_ref, w1_ref, b1_ref, w2_ref, b2_ref, o_ref, acc_ref):
    # x_ref:  (tm, hid_p)   token tile (resident across the pf axis)
    # w1_ref: (hid_p, tk)   fc_1 weight chunk
    # b1_ref: (1, tk)       fc_1 bias chunk (f32)
    # w2_ref: (tk, hid_p)   fc_2 weight chunk
    # b2_ref: (1, hid_p)    fc_2 bias (f32)
    # o_ref:  (tm, hid_p)   output tile
    # acc_ref:(tm, hid_p)   f32 accumulator scratch
    k = pl.program_id(1)

    @pl.when(k == 0)
    def _init():
        acc_ref[...] = jnp.zeros_like(acc_ref)

    # fc_1 chunk + bias + ReLU (dropout == identity in eval mode).
    h = jnp.dot(x_ref[...], w1_ref[...], preferred_element_type=jnp.float32)
    h = jnp.maximum(h + b1_ref[...], 0.0)

    # fc_2 partial product, accumulated in f32.
    acc_ref[...] += jnp.dot(h.astype(w2_ref.dtype), w2_ref[...],
                            preferred_element_type=jnp.float32)

    @pl.when(k == pl.num_programs(1) - 1)
    def _finalize():
        o_ref[...] = (acc_ref[...] + b2_ref[...]).astype(o_ref.dtype)


def _round_up(x, m):
    return ((x + m - 1) // m) * m


def positionwise_feedforward(x, w1, b1, w2, b2, *, tm=256, tk=512,
                             compute_dtype=jnp.bfloat16):
    """x: [B, S, hid] -> [B, S, hid].

    w1: [hid, pf], b1: [pf], w2: [pf, hid], b2: [hid]
    (PyTorch Conv1d weights with the trailing k=1 axis squeezed and transposed so the
     kernel computes x @ W.)
    """
    B, S, hid = x.shape
    pf = w1.shape[1]
    N = B * S

    # Pad channel dims to 128-lane multiples and tokens to the row tile.
    hid_p = _round_up(hid, 128)
    pf_128 = _round_up(pf, 128)
    tk = _round_up(min(tk, pf_128), 128)
    pf_p = _round_up(pf_128, tk)
    n_p = _round_up(N, tm)
    nt, nk = n_p // tm, pf_p // tk

    out_dtype = x.dtype
    in_bytes = jnp.dtype(compute_dtype).itemsize
    out_bytes = jnp.dtype(out_dtype).itemsize

    # Zero-padded, compute-dtype operands (zero padding does not change valid outputs).
    x2d = jnp.pad(x.reshape(N, hid), ((0, n_p - N), (0, hid_p - hid))).astype(compute_dtype)
    w1_p = jnp.pad(w1, ((0, hid_p - hid), (0, pf_p - pf))).astype(compute_dtype)
    w2_p = jnp.pad(w2, ((0, pf_p - pf), (0, hid_p - hid))).astype(compute_dtype)
    b1_p = jnp.pad(b1, (0, pf_p - pf)).reshape(1, pf_p).astype(jnp.float32)
    b2_p = jnp.pad(b2, (0, hid_p - hid)).reshape(1, hid_p).astype(jnp.float32)

    # VMEM budget sized from the actual buffers (x/out double-buffered, weight chunks,
    # biases, accumulator, (tm, tk) intermediate), with headroom.
    est = (2 * tm * hid_p * (in_bytes + out_bytes)
           + 2 * 2 * hid_p * tk * in_bytes
           + 2 * (tk + hid_p) * 4
           + tm * hid_p * 4
           + tm * tk * 4)
    vmem_limit = int(min(64 * 2**20, max(2 * est + (4 << 20), 32 * 2**20)))

    cost = pl.CostEstimate(
        flops=4 * n_p * hid_p * pf_p,
        transcendentals=0,
        bytes_accessed=(n_p * hid_p * (in_bytes + out_bytes)
                        + 2 * hid_p * pf_p * in_bytes
                        + (pf_p + hid_p) * 4),
    )

    # If the whole pf fits in one chunk, the weight/bias index maps are constant and
    # double-buffering them is pure VMEM waste -> single-buffer them.
    weights_constant = (nk == 1)

    def _spec(shape, index_map, constant, use_buffered):
        if constant and use_buffered:
            return pl.BlockSpec(shape, index_map, pipeline_mode=pl.Buffered(1))
        return pl.BlockSpec(shape, index_map)

    def _run(use_buffered):
        grid_spec = pltpu.PrefetchScalarGridSpec(
            num_scalar_prefetch=0,
            grid=(nt, nk),
            in_specs=[
                pl.BlockSpec((tm, hid_p), lambda i, k: (i, 0)),              # x tile
                _spec((hid_p, tk), lambda i, k: (0, k), weights_constant, use_buffered),
                _spec((1, tk), lambda i, k: (0, k), weights_constant, use_buffered),
                _spec((tk, hid_p), lambda i, k: (k, 0), weights_constant, use_buffered),
                _spec((1, hid_p), lambda i, k: (0, 0), True, use_buffered),
            ],
            out_specs=pl.BlockSpec((tm, hid_p), lambda i, k: (i, 0)),
            scratch_shapes=[pltpu.VMEM((tm, hid_p), jnp.float32)],
        )
        return pl.pallas_call(
            _pwff_kernel,
            out_shape=jax.ShapeDtypeStruct((n_p, hid_p), out_dtype),
            grid_spec=grid_spec,
            compiler_params=pltpu.CompilerParams(
                dimension_semantics=("parallel", "arbitrary"),
                vmem_limit_bytes=vmem_limit),
            cost_estimate=cost,
        )(x2d, w1_p, b1_p, w2_p, b2_p)

    try:
        out2d = _run(use_buffered=True)
    except Exception:
        # Fallback: default double-buffering if Buffered(1) is rejected by this jax build.
        out2d = _run(use_buffered=False)

    return out2d[:N, :hid].reshape(B, S, hid)


def _reference(x, w1, b1, w2, b2, compute_dtype):
    """Pure-JAX reference matching the kernel's bf16-operand / f32-accumulate path."""
    xb = x.astype(compute_dtype)
    h = jnp.einsum("bsh,hp->bsp", xb, w1.astype(compute_dtype),
                   preferred_element_type=jnp.float32) + b1
    h = jnp.maximum(h, 0.0).astype(compute_dtype)
    y = jnp.einsum("bsp,ph->bsh", h, w2.astype(compute_dtype),
                   preferred_element_type=jnp.float32) + b2
    return y.astype(x.dtype)


if __name__ == "__main__":
    # Small shapes consistent with the module: batch=2, seq=8, hid_dim=32, pf_dim=64
    B, S, HID, PF = 2, 8, 32, 64
    key = jax.random.PRNGKey(0)
    kx, kw1, kb1, kw2, kb2 = jax.random.split(key, 5)

    x = jax.random.normal(kx, (B, S, HID), dtype=jnp.float32)

    # PyTorch Conv1d weights are [out, in, 1]; materialize them squeezed + transposed so
    # the kernel does x @ W. Deterministic synthetic init (scaled normal).
    w1_conv = jax.random.normal(kw1, (PF, HID, 1), dtype=jnp.float32) * (1.0 / HID ** 0.5)
    b1 = jax.random.normal(kb1, (PF,), dtype=jnp.float32) * 0.01
    w2_conv = jax.random.normal(kw2, (HID, PF, 1), dtype=jnp.float32) * (1.0 / PF ** 0.5)
    b2 = jax.random.normal(kb2, (HID,), dtype=jnp.float32) * 0.01

    w1 = jnp.squeeze(w1_conv, -1).T   # [HID, PF]
    w2 = jnp.squeeze(w2_conv, -1).T   # [PF, HID]

    out = positionwise_feedforward(x, w1, b1, w2, b2)
    out = jax.block_until_ready(out)

    ref = _reference(x, w1, b1, w2, b2, jnp.bfloat16)
    assert out.shape == (B, S, HID)
    assert jnp.allclose(out, ref, atol=2e-2, rtol=2e-2), "mismatch vs reference"

    print("KERNEL_OK")
</pallas_src>

<mosaic_0001>
module attributes {stable_mosaic.version = 11 : i64} {
  func.func @_pwff_kernel(%arg0: i32, %arg1: i32, %arg2: memref<256x128xbf16, #tpu.memory_space<vmem>>, %arg3: memref<128x128xbf16, #tpu.memory_space<vmem>>, %arg4: memref<1x128xf32, #tpu.memory_space<vmem>>, %arg5: memref<128x128xbf16, #tpu.memory_space<vmem>>, %arg6: memref<1x128xf32, #tpu.memory_space<vmem>>, %arg7: memref<256x128xf32, #tpu.memory_space<vmem>>, %arg8: memref<256x128xf32, #tpu.memory_space<vmem>>) attributes {dimension_semantics = [#tpu.dimension_semantics<parallel>, #tpu.dimension_semantics<arbitrary>], iteration_bounds = array<i64: 1, 1>, scalar_prefetch = 0 : i64, scratch_operands = 1 : i64, tpu.core_type = #tpu.core_type<tc>, window_params = [{transform_indices = @transform_0, window_bounds = array<i64: 256, 128>}, {pipeline_mode = #tpu.pipeline_mode<synchronous>, transform_indices = @transform_1, window_bounds = array<i64: 128, 128>}, {pipeline_mode = #tpu.pipeline_mode<synchronous>, transform_indices = @transform_2, window_bounds = array<i64: 1, 128>}, {pipeline_mode = #tpu.pipeline_mode<synchronous>, transform_indices = @transform_3, window_bounds = array<i64: 128, 128>}, {pipeline_mode = #tpu.pipeline_mode<synchronous>, transform_indices = @transform_4, window_bounds = array<i64: 1, 128>}, {transform_indices = @transform_5, window_bounds = array<i64: 256, 128>}]} {
    %c0_i32 = arith.constant 0 : i32
    %0 = arith.cmpi eq, %arg1, %c0_i32 : i32
    %1 = arith.extui %0 : i1 to i32
    %c0_i32_0 = arith.constant 0 : i32
    %2 = arith.cmpi ne, %1, %c0_i32_0 : i32
    scf.if %2 {
      %cst_16 = arith.constant 0.000000e+00 : f32
      %20 = vector.broadcast %cst_16 : f32 to vector<256x128xf32>
      %c0_17 = arith.constant 0 : index
      %c0_18 = arith.constant 0 : index
      %21 = vector.load %arg8[%c0_17, %c0_18] : memref<256x128xf32, #tpu.memory_space<vmem>>, vector<256x128xf32>
      tpu.vector_store %arg8[%c0_17, %c0_18], %20 {strides = array<i32>} : memref<256x128xf32, #tpu.memory_space<vmem>>, vector<256x128xf32>,
    } else {
    }
    %c0 = arith.constant 0 : index
    %c0_1 = arith.constant 0 : index
    %3 = vector.load %arg2[%c0, %c0_1] : memref<256x128xbf16, #tpu.memory_space<vmem>>, vector<256x128xbf16>
    %c0_2 = arith.constant 0 : index
    %c0_3 = arith.constant 0 : index
    %4 = vector.load %arg3[%c0_2, %c0_3] : memref<128x128xbf16, #tpu.memory_space<vmem>>, vector<128x128xbf16>
    %cst = arith.constant dense<0.000000e+00> : vector<256x128xf32>
    %5 = tpu.matmul %3, %4, %cst {dimension_numbers = #tpu.dot_dimension_numbers<[1], [0], [0], [1], [0, 0, 1, 1], [], []>} : vector<256x128xbf16>, vector<128x128xbf16>, vector<256x128xf32> -> vector<256x128xf32>
    %c0_4 = arith.constant 0 : index
    %c0_5 = arith.constant 0 : index
    %6 = vector.load %arg4[%c0_4, %c0_5] : memref<1x128xf32, #tpu.memory_space<vmem>>, vector<1x128xf32>
    %7 = vector.broadcast %6 : vector<1x128xf32> to vector<256x128xf32>
    %8 = arith.addf %5, %7 : vector<256x128xf32>
    %cst_6 = arith.constant 0.000000e+00 : f32
    %9 = vector.broadcast %cst_6 : f32 to vector<256x128xf32>
    %10 = arith.maximumf %8, %9 : vector<256x128xf32>
    %c0_7 = arith.constant 0 : index
    %c0_8 = arith.constant 0 : index
    %11 = vector.load %arg8[%c0_7, %c0_8] : memref<256x128xf32, #tpu.memory_space<vmem>>, vector<256x128xf32>
    %12 = arith.truncf %10 : vector<256x128xf32> to vector<256x128xbf16>
    %c0_9 = arith.constant 0 : index
    %c0_10 = arith.constant 0 : index
    %13 = vector.load %arg5[%c0_9, %c0_10] : memref<128x128xbf16, #tpu.memory_space<vmem>>, vector<128x128xbf16>
    %cst_11 = arith.constant dense<0.000000e+00> : vector<256x128xf32>
    %14 = tpu.matmul %12, %13, %cst_11 {dimension_numbers = #tpu.dot_dimension_numbers<[1], [0], [0], [1], [0, 0, 1, 1], [], []>} : vector<256x128xbf16>, vector<128x128xbf16>, vector<256x128xf32> -> vector<256x128xf32>
    %15 = arith.addf %11, %14 : vector<256x128xf32>
    %c0_12 = arith.constant 0 : index
    %c0_13 = arith.constant 0 : index
    %16 = vector.load %arg8[%c0_12, %c0_13] : memref<256x128xf32, #tpu.memory_space<vmem>>, vector<256x128xf32>
    tpu.vector_store %arg8[%c0_12, %c0_13], %15 {strides = array<i32>} : memref<256x128xf32, #tpu.memory_space<vmem>>, vector<256x128xf32>,
    %c0_i32_14 = arith.constant 0 : i32
    %17 = arith.cmpi eq, %arg1, %c0_i32_14 : i32
    %18 = arith.extui %17 : i1 to i32
    %c0_i32_15 = arith.constant 0 : i32
    %19 = arith.cmpi ne, %18, %c0_i32_15 : i32
    scf.if %19 {
      %c0_16 = arith.constant 0 : index
      %c0_17 = arith.constant 0 : index
      %20 = vector.load %arg8[%c0_16, %c0_17] : memref<256x128xf32, #tpu.memory_space<vmem>>, vector<256x128xf32>
      %c0_18 = arith.constant 0 : index
      %c0_19 = arith.constant 0 : index
      %21 = vector.load %arg6[%c0_18, %c0_19] : memref<1x128xf32, #tpu.memory_space<vmem>>, vector<1x128xf32>
      %22 = vector.broadcast %21 : vector<1x128xf32> to vector<256x128xf32>
      %23 = arith.addf %20, %22 : vector<256x128xf32>
      %c0_20 = arith.constant 0 : index
      %c0_21 = arith.constant 0 : index
      %24 = vector.load %arg7[%c0_20, %c0_21] : memref<256x128xf32, #tpu.memory_space<vmem>>, vector<256x128xf32>
      tpu.vector_store %arg7[%c0_20, %c0_21], %23 {strides = array<i32>} : memref<256x128xf32, #tpu.memory_space<vmem>>, vector<256x128xf32>,
    } else {
    }
    return
  }
  func.func @transform_0(%arg0: i32, %arg1: i32) -> (i32, i32) {
    %c0_i32 = arith.constant 0 : i32
    %c0_i32_0 = arith.constant 0 : i32
    return %arg0, %c0_i32 : i32, i32
  }
  func.func @transform_1(%arg0: i32, %arg1: i32) -> (i32, i32) {
    %c0_i32 = arith.constant 0 : i32
    %c0_i32_0 = arith.constant 0 : i32
    return %c0_i32, %arg1 : i32, i32
  }
  func.func @transform_2(%arg0: i32, %arg1: i32) -> (i32, i32) {
    %c0_i32 = arith.constant 0 : i32
    %c0_i32_0 = arith.constant 0 : i32
    return %c0_i32, %arg1 : i32, i32
  }
  func.func @transform_3(%arg0: i32, %arg1: i32) -> (i32, i32) {
    %c0_i32 = arith.constant 0 : i32
    %c0_i32_0 = arith.constant 0 : i32
    return %arg1, %c0_i32 : i32, i32
  }
  func.func @transform_4(%arg0: i32, %arg1: i32) -> (i32, i32) {
    %c0_i32 = arith.constant 0 : i32
    %c0_i32_0 = arith.constant 0 : i32
    %c0_i32_1 = arith.constant 0 : i32
    return %c0_i32, %c0_i32_0 : i32, i32
  }
  func.func @transform_5(%arg0: i32, %arg1: i32) -> (i32, i32) {
    %c0_i32 = arith.constant 0 : i32
    %c0_i32_0 = arith.constant 0 : i32
    return %arg0, %c0_i32 : i32, i32
  }
}

module attributes {stable_mosaic.version = 11 : i64} {
  func.func @_pwff_kernel(%arg0: i32, %arg1: i32, %arg2: memref<256x128xbf16, #tpu.memory_space<vmem>>, %arg3: memref<128x128xbf16, #tpu.memory_space<vmem>>, %arg4: memref<1x128xf32, #tpu.memory_space<vmem>>, %arg5: memref<128x128xbf16, #tpu.memory_space<vmem>>, %arg6: memref<1x128xf32, #tpu.memory_space<vmem>>, %arg7: memref<256x128xf32, #tpu.memory_space<vmem>>, %arg8: memref<256x128xf32, #tpu.memory_space<vmem>>) attributes {dimension_semantics = [#tpu.dimension_semantics<parallel>, #tpu.dimension_semantics<arbitrary>], iteration_bounds = array<i64: 1, 1>, scalar_prefetch = 0 : i64, scratch_operands = 1 : i64, tpu.core_type = #tpu.core_type<tc>, window_params = [{transform_indices = @transform_0, window_bounds = array<i64: 256, 128>}, {transform_indices = @transform_1, window_bounds = array<i64: 128, 128>}, {transform_indices = @transform_2, window_bounds = array<i64: 1, 128>}, {transform_indices = @transform_3, window_bounds = array<i64: 128, 128>}, {pipeline_mode = #tpu.pipeline_mode<synchronous>, transform_indices = @transform_4, window_bounds = array<i64: 1, 128>}, {transform_indices = @transform_5, window_bounds = array<i64: 256, 128>}]} {
    %c0_i32 = arith.constant 0 : i32
    %0 = arith.cmpi eq, %arg1, %c0_i32 : i32
    %1 = arith.extui %0 : i1 to i32
    %c0_i32_0 = arith.constant 0 : i32
    %2 = arith.cmpi ne, %1, %c0_i32_0 : i32
    scf.if %2 {
      %cst_16 = arith.constant 0.000000e+00 : f32
      %20 = vector.broadcast %cst_16 : f32 to vector<256x128xf32>
      %c0_17 = arith.constant 0 : index
      %c0_18 = arith.constant 0 : index
      %21 = vector.load %arg8[%c0_17, %c0_18] : memref<256x128xf32, #tpu.memory_space<vmem>>, vector<256x128xf32>
      tpu.vector_store %arg8[%c0_17, %c0_18], %20 {strides = array<i32>} : memref<256x128xf32, #tpu.memory_space<vmem>>, vector<256x128xf32>,
    } else {
    }
    %c0 = arith.constant 0 : index
    %c0_1 = arith.constant 0 : index
    %3 = vector.load %arg2[%c0, %c0_1] : memref<256x128xbf16, #tpu.memory_space<vmem>>, vector<256x128xbf16>
    %c0_2 = arith.constant 0 : index
    %c0_3 = arith.constant 0 : index
    %4 = vector.load %arg3[%c0_2, %c0_3] : memref<128x128xbf16, #tpu.memory_space<vmem>>, vector<128x128xbf16>
    %cst = arith.constant dense<0.000000e+00> : vector<256x128xf32>
    %5 = tpu.matmul %3, %4, %cst {dimension_numbers = #tpu.dot_dimension_numbers<[1], [0], [0], [1], [0, 0, 1, 1], [], []>} : vector<256x128xbf16>, vector<128x128xbf16>, vector<256x128xf32> -> vector<256x128xf32>
    %c0_4 = arith.constant 0 : index
    %c0_5 = arith.constant 0 : index
    %6 = vector.load %arg4[%c0_4, %c0_5] : memref<1x128xf32, #tpu.memory_space<vmem>>, vector<1x128xf32>
    %7 = vector.broadcast %6 : vector<1x128xf32> to vector<256x128xf32>
    %8 = arith.addf %5, %7 : vector<256x128xf32>
    %cst_6 = arith.constant 0.000000e+00 : f32
    %9 = vector.broadcast %cst_6 : f32 to vector<256x128xf32>
    %10 = arith.maximumf %8, %9 : vector<256x128xf32>
    %c0_7 = arith.constant 0 : index
    %c0_8 = arith.constant 0 : index
    %11 = vector.load %arg8[%c0_7, %c0_8] : memref<256x128xf32, #tpu.memory_space<vmem>>, vector<256x128xf32>
    %12 = arith.truncf %10 : vector<256x128xf32> to vector<256x128xbf16>
    %c0_9 = arith.constant 0 : index
    %c0_10 = arith.constant 0 : index
    %13 = vector.load %arg5[%c0_9, %c0_10] : memref<128x128xbf16, #tpu.memory_space<vmem>>, vector<128x128xbf16>
    %cst_11 = arith.constant dense<0.000000e+00> : vector<256x128xf32>
    %14 = tpu.matmul %12, %13, %cst_11 {dimension_numbers = #tpu.dot_dimension_numbers<[1], [0], [0], [1], [0, 0, 1, 1], [], []>} : vector<256x128xbf16>, vector<128x128xbf16>, vector<256x128xf32> -> vector<256x128xf32>
    %15 = arith.addf %11, %14 : vector<256x128xf32>
    %c0_12 = arith.constant 0 : index
    %c0_13 = arith.constant 0 : index
    %16 = vector.load %arg8[%c0_12, %c0_13] : memref<256x128xf32, #tpu.memory_space<vmem>>, vector<256x128xf32>
    tpu.vector_store %arg8[%c0_12, %c0_13], %15 {strides = array<i32>} : memref<256x128xf32, #tpu.memory_space<vmem>>, vector<256x128xf32>,
    %c0_i32_14 = arith.constant 0 : i32
    %17 = arith.cmpi eq, %arg1, %c0_i32_14 : i32
    %18 = arith.extui %17 : i1 to i32
    %c0_i32_15 = arith.constant 0 : i32
    %19 = arith.cmpi ne, %18, %c0_i32_15 : i32
    scf.if %19 {
      %c0_16 = arith.constant 0 : index
      %c0_17 = arith.constant 0 : index
      %20 = vector.load %arg8[%c0_16, %c0_17] : memref<256x128xf32, #tpu.memory_space<vmem>>, vector<256x128xf32>
      %c0_18 = arith.constant 0 : index
      %c0_19 = arith.constant 0 : index
      %21 = vector.load %arg6[%c0_18, %c0_19] : memref<1x128xf32, #tpu.memory_space<vmem>>, vector<1x128xf32>
      %22 = vector.broadcast %21 : vector<1x128xf32> to vector<256x128xf32>
      %23 = arith.addf %20, %22 : vector<256x128xf32>
      %c0_20 = arith.constant 0 : index
      %c0_21 = arith.constant 0 : index
      %24 = vector.load %arg7[%c0_20, %c0_21] : memref<256x128xf32, #tpu.memory_space<vmem>>, vector<256x128xf32>
      tpu.vector_store %arg7[%c0_20, %c0_21], %23 {strides = array<i32>} : memref<256x128xf32, #tpu.memory_space<vmem>>, vector<256x128xf32>,
    } else {
    }
    return
  }
  func.func @transform_0(%arg0: i32, %arg1: i32) -> (i32, i32) {
    %c0_i32 = arith.constant 0 : i32
    %c0_i32_0 = arith.constant 0 : i32
    return %arg0, %c0_i32 : i32, i32
  }
  func.func @transform_1(%arg0: i32, %arg1: i32) -> (i32, i32) {
    %c0_i32 = arith.constant 0 : i32
    %c0_i32_0 = arith.constant 0 : i32
    return %c0_i32, %arg1 : i32, i32
  }
  func.func @transform_2(%arg0: i32, %arg1: i32) -> (i32, i32) {
    %c0_i32 = arith.constant 0 : i32
    %c0_i32_0 = arith.constant 0 : i32
    return %c0_i32, %arg1 : i32, i32
  }
  func.func @transform_3(%arg0: i32, %arg1: i32) -> (i32, i32) {
    %c0_i32 = arith.constant 0 : i32
    %c0_i32_0 = arith.constant 0 : i32
    return %arg1, %c0_i32 : i32, i32
  }
  func.func @transform_4(%arg0: i32, %arg1: i32) -> (i32, i32) {
    %c0_i32 = arith.constant 0 : i32
    %c0_i32_0 = arith.constant 0 : i32
    %c0_i32_1 = arith.constant 0 : i32
    return %c0_i32, %c0_i32_0 : i32, i32
  }
  func.func @transform_5(%arg0: i32, %arg1: i32) -> (i32, i32) {
    %c0_i32 = arith.constant 0 : i32
    %c0_i32_0 = arith.constant 0 : i32
    return %arg0, %c0_i32 : i32, i32
  }
}

</mosaic_0001>

<bundles_post_ra>
// kernel: tpu_custom_call.1
= control target key start
LH: loop header
LB: loop body
LE: loop exit
PB: predicated region body
PF: predicated region fallthrough
CT: control target
= control target key end

     0   :  { %10 = vsyncpa [#allocation4], 0  ;;  %s1440_s0 = inlined_call_operand.hbm [shape: bf16[256,128], index: 0, kind: input, shape index: {}]   ;;  %s1441_s1 = inlined_call_operand.hbm [shape: bf16[128,128], index: 1, kind: input, shape index: {}]   ;;  %s1442_s2 = inlined_call_operand.vmem [shape: f32[1,128], index: 2, kind: input, shape index: {}]   ;;  %s1443_s3 = inlined_call_operand.hbm [shape: bf16[128,128], index: 3, kind: input, shape index: {}]   ;;  %s1444_s4 = inlined_call_operand.vmem [shape: f32[1,128], index: 4, kind: input, shape index: {}]   ;;  %s1445_s5 = inlined_call_operand.hbm [shape: f32[256,128], index: 5, kind: output, shape index: {}]  }
   0x1   :  { %11 = vsyncpa [#allocation7], 0 }
   0x2   :  { %12 = vsyncpa [#allocation5], 0  ;;  %s1264_s18 = smov [#allocation6]   ;;  %s1265_s20 = smov [#allocation3]  }
   0x3   :  { %s30_s19 = sshll.u32 %s1264_s18, 4  ;;  %s18_s21 = sshll.u32 %s1265_s20, 4  ;;  %s31_s19 = int_to_ptr.vmem [resolvable:$true] %s30_s19  ;;  %s1302_s21 = int_to_ptr.vmem [resolvable:$true] %s18_s21 }
   0x4   :  { %s1170_s24 = scalar_lea.hbm %s1441_s1, 1024 }
   0x5   :  { %p1171_p0 = scmp.ne.s32.totalorder %s1441_s1, %s1170_s24  ;;  %p1174_p1 = scmp.lt.u32.totalorder %s1170_s24, %s1441_s1 }
   0x7   :  { %p1176_p2 = pnand %p1174_p1, %p1171_p0 }
   0x9   :  { %1179 = shalt.err (!%p1176_p2)
}
   0xa   :  { %s1180_s29 = scalar_lea.vmem %s31_s19, 1024  ;;  %p1185_p4 = scmp.lt.s32.totalorder %s31_s19, %s31_s19 }
   0xb   :  { %p1181_p3 = scmp.ne.s32.totalorder %s31_s19, %s1180_s29  ;;  %p1186_p5 = scmp.lt.s32.totalorder %s1180_s29, %s1180_s29 }
   0xd   :  { %p1187_p6 = por %p1186_p5, %p1185_p4 }
   0xf   :  { %p1188_p7 = pnand %p1187_p6, %p1181_p3 }
  0x11   :  { %1191 = shalt.err (!%p1188_p7)
}
  0x12   :  { %s1266_s30 = smov 64   ;;  %s1267_s6 = smov 4  }
  0x13   :  { %36 = dma.hbm_to_vmem [thread:$0]  %s1441_s1, 1024, %s31_s19, [#allocation7], %s1266_s30, %s1266_s30, %s1267_s6  }
  0x14   :  { %s1192_s11 = scalar_lea.hbm %s1440_s0, 2048 }
  0x15   :  { %p1193_p8 = scmp.ne.s32.totalorder %s1440_s0, %s1192_s11  ;;  %p1196_p9 = scmp.lt.u32.totalorder %s1192_s11, %s1440_s0 }
  0x17   :  { %p1198_p10 = pnand %p1196_p9, %p1193_p8 }
  0x19   :  { %1201 = shalt.err (!%p1198_p10)
}
  0x1a   :  { %s1202_s16 = scalar_lea.vmem %s1302_s21, 2048  ;;  %p1207_p12 = scmp.lt.s32.totalorder %s1302_s21, %s1302_s21 }
  0x1b   :  { %p1203_p11 = scmp.ne.s32.totalorder %s1302_s21, %s1202_s16  ;;  %p1208_p13 = scmp.lt.s32.totalorder %s1202_s16, %s1202_s16 }
  0x1d   :  { %p1209_p0 = por %p1208_p13, %p1207_p12 }
  0x1f   :  { %p1210_p1 = pnand %p1209_p0, %p1203_p11 }
  0x21   :  { %1213 = shalt.err (!%p1210_p1)
}
  0x22   :  { %24 = dma.hbm_to_vmem [thread:$0]  %s1440_s0, 2048, %s1302_s21, [#allocation4], %s1266_s30, %s1266_s30, %s1267_s6  }
  0x23   :  { %s1268_s18 = smov [#allocation8]   ;;  %s1214_s23 = scalar_lea.hbm %s1443_s3, 1024 }
  0x24   :  { %s44_s19 = sshll.u32 %s1268_s18, 4  ;;  %p1215_p2 = scmp.ne.s32.totalorder %s1443_s3, %s1214_s23  ;;  %s45_s19 = int_to_ptr.vmem [resolvable:$true] %s44_s19 }
  0x25   :  { %p1218_p3 = scmp.lt.u32.totalorder %s1214_s23, %s1443_s3 }
  0x27   :  { %p1220_p4 = pnand %p1218_p3, %p1215_p2 }
  0x29   :  { %1223 = shalt.err (!%p1220_p4)
}
  0x2a   :  { %s1224_s28 = scalar_lea.vmem %s45_s19, 1024  ;;  %p1229_p6 = scmp.lt.s32.totalorder %s45_s19, %s45_s19 }
  0x2b   :  { %p1225_p5 = scmp.ne.s32.totalorder %s45_s19, %s1224_s28  ;;  %p1230_p7 = scmp.lt.s32.totalorder %s1224_s28, %s1224_s28 }
  0x2d   :  { %p1231_p8 = por %p1230_p7, %p1229_p6 }
  0x2f   :  { %p1232_p9 = pnand %p1231_p8, %p1225_p5 }
  0x31   :  { %1235 = shalt.err (!%p1232_p9)
}
  0x32   :  { %50 = dma.hbm_to_vmem [thread:$0]  %s1443_s3, 1024, %s45_s19, [#allocation7], %s1266_s30, %s1266_s30, %s1267_s6  }
  0x33   :  { %1258 = dma.done.wait [#allocation4], 2048  }
  0x34   :  { %1259 = vsyncadd [#allocation4], 4294965248 }
  0x35   :  { %1260 = dma.done.wait [#allocation7], 2048  }
  0x36   :  { %1261 = vsyncadd [#allocation7], 4294965248  ;;  %v1138_v0 = vld [vmem:[#allocation6] sm:$0xff]   ;;  %v1139_v1 = vld [vmem:[#allocation6 + $0x8] sm:$0xff]  }
  0x37   :  { %1034 = vmatprep.subr.bf16.mxu0 %v1138_v0  ;;  %v1140_v2 = vld [vmem:[#allocation6 + $0x10] sm:$0xff]   ;;  %v1141_v3 = vld [vmem:[#allocation6 + $0x18] sm:$0xff]   ;;  %v1146_v4 = vld [vmem:[#allocation3] sm:$0xff]  }
  0x38   :  { %1035 = vmatpush3.bf16.msra.mxu0 %v1138_v0  ;;  %1050 = vmatprep.mubr.bf16.mxu0 %v1146_v4  ;;  %v1142_v5 = vld [vmem:[#allocation6 + $0x20] sm:$0xff]   ;;  %v1143_v6 = vld [vmem:[#allocation6 + $0x28] sm:$0xff]   ;;  %v1144_v7 = vld [vmem:[#allocation6 + $0x30] sm:$0xff]  }
  0x39   :  { %1036 = vmatprep.subr.bf16.mxu0 %v1139_v1  ;;  %v1145_v8 = vld [vmem:[#allocation6 + $0x38] sm:$0xff]   ;;  %v1162_v9 = vld [vmem:[#allocation8] sm:$0xff]   ;;  %v1163_v10 = vld [vmem:[#allocation8 + $0x8] sm:$0xff]  }
  0x3a   :  { %1082 = vmatprep.subr.bf16.mxu1 %v1162_v9  ;;  %v1164_v11 = vld [vmem:[#allocation8 + $0x10] sm:$0xff]   ;;  %v1147_v12 = vld [vmem:[#allocation3 + $0x8] sm:$0xff]   ;;  %v1165_v14 = vld [vmem:[#allocation8 + $0x18] sm:$0xff]  }
  0x3b   :  { %1083 = vmatpush3.bf16.msra.mxu1 %v1162_v9  ;;  %v1148_v13 = vld [vmem:[#allocation3 + $0x10] sm:$0xff]   ;;  %v1166_v15 = vld [vmem:[#allocation8 + $0x20] sm:$0xff]   ;;  %v1149_v16 = vld [vmem:[#allocation3 + $0x18] sm:$0xff]  }
  0x3c   :  { %1037 = vmatpush3.bf16.msra.mxu0 %v1139_v1  ;;  %1084 = vmatprep.subr.bf16.mxu1 %v1163_v10  ;;  %v1150_v17 = vld [vmem:[#allocation3 + $0x20] sm:$0xff]   ;;  %v1167_v18 = vld [vmem:[#allocation8 + $0x28] sm:$0xff]   ;;  %v1152_v20 = vld [vmem:[#allocation3 + $0x30] sm:$0xff]  }
  0x3d   :  { %1038 = vmatprep.subr.bf16.mxu0 %v1140_v2  ;;  %v1151_v19 = vld [vmem:[#allocation3 + $0x28] sm:$0xff]   ;;  %v1153_v21 = vld [vmem:[#allocation3 + $0x38] sm:$0xff]   ;;  %v1154_v22 = vld [vmem:[#allocation3 + $0x40] sm:$0xff]  }
  0x3e   :  { %v1155_v23 = vld [vmem:[#allocation3 + $0x48] sm:$0xff]   ;;  %v1156_v24 = vld [vmem:[#allocation3 + $0x50] sm:$0xff]   ;;  %v1157_v25 = vld [vmem:[#allocation3 + $0x58] sm:$0xff]  }
  0x3f   :  { %1085 = vmatpush3.bf16.msra.mxu1 %v1163_v10  ;;  %v1158_v26 = vld [vmem:[#allocation3 + $0x60] sm:$0xff]   ;;  %v1159_v27 = vld [vmem:[#allocation3 + $0x68] sm:$0xff]   ;;  %v1160_v28 = vld [vmem:[#allocation3 + $0x70] sm:$0xff]  }
  0x40   :  { %1039 = vmatpush3.bf16.msra.mxu0 %v1140_v2  ;;  %1086 = vmatprep.subr.bf16.mxu1 %v1164_v11  ;;  %v1161_v29 = vld [vmem:[#allocation3 + $0x78] sm:$0xff]   ;;  %v1168_v30 = vld [vmem:[#allocation8 + $0x30] sm:$0xff]   ;;  %v1357_v32 = vld [vmem:[%s1442_s2] ss:$0 sm:$0xff] }
  0x41   :  { %1040 = vmatprep.subr.bf16.mxu0 %v1141_v3  ;;  %v1169_v31 = vld [vmem:[#allocation8 + $0x38] sm:$0xff]  }
  0x43   :  { %1087 = vmatpush3.bf16.msra.mxu1 %v1164_v11 }
  0x44   :  { %1041 = vmatpush3.bf16.msra.mxu0 %v1141_v3  ;;  %1088 = vmatprep.subr.bf16.mxu1 %v1165_v14 }
  0x45   :  { %1042 = vmatprep.subr.bf16.mxu0 %v1142_v5 }
  0x47   :  { %1089 = vmatpush3.bf16.msra.mxu1 %v1165_v14 }
  0x48   :  { %1043 = vmatpush3.bf16.msra.mxu0 %v1142_v5  ;;  %1090 = vmatprep.subr.bf16.mxu1 %v1166_v15 }
  0x49   :  { %1044 = vmatprep.subr.bf16.mxu0 %v1143_v6 }
  0x4b   :  { %1091 = vmatpush3.bf16.msra.mxu1 %v1166_v15 }
  0x4c   :  { %1045 = vmatpush3.bf16.msra.mxu0 %v1143_v6  ;;  %1092 = vmatprep.subr.bf16.mxu1 %v1167_v18 }
  0x4d   :  { %1046 = vmatprep.subr.bf16.mxu0 %v1144_v7 }
  0x4f   :  { %1093 = vmatpush3.bf16.msra.mxu1 %v1167_v18 }
  0x50   :  { %1047 = vmatpush3.bf16.msra.mxu0 %v1144_v7  ;;  %1094 = vmatprep.subr.bf16.mxu1 %v1168_v30 }
  0x51   :  { %1048 = vmatprep.subr.bf16.mxu0 %v1145_v8 }
  0x53   :  { %1095 = vmatpush3.bf16.msra.mxu1 %v1168_v30 }
  0x54   :  { %1049 = vmatpush3.bf16.msra.mxu0 %v1145_v8  ;;  %1096 = vmatprep.subr.bf16.mxu1 %v1169_v31 }
  0x57   :  { %1051 = vmatmul.mubr.bf16.vlgmr.msra.gmra.mrb[0].mxu0 %v1147_v12  ;;  %1097 = vmatpush3.bf16.msra.mxu1 %v1169_v31 }
  0x58   :  { %1054 = vmatprep.mubr.bf16.mxu0 %v1148_v13 }
  0x5f   :  { %1055 = vmatmul.mubr.bf16.gmra.mrb[4].mxu0 %v1149_v16 }
  0x60   :  { %1058 = vmatprep.mubr.bf16.mxu0 %v1150_v17 }
  0x67   :  { %1059 = vmatmul.mubr.bf16.gmra.mrb[8].mxu0 %v1151_v19 }
  0x68   :  { %1062 = vmatprep.mubr.bf16.mxu0 %v1152_v20 }
  0x6f   :  { %1063 = vmatmul.mubr.bf16.gmra.mrb[12].mxu0 %v1153_v21 }
  0x70   :  { %1066 = vmatprep.mubr.bf16.mxu0 %v1154_v22 }
  0x77   :  { %1067 = vmatmul.mubr.bf16.gmra.mrb[16].mxu0 %v1155_v23 }
  0x78   :  { %1070 = vmatprep.mubr.bf16.mxu0 %v1156_v24 }
  0x7f   :  { %1071 = vmatmul.mubr.bf16.gmra.mrb[20].mxu0 %v1157_v25 }
  0x80   :  { %1074 = vmatprep.mubr.bf16.mxu0 %v1158_v26 }
  0x87   :  { %1075 = vmatmul.mubr.bf16.gmra.mrb[24].mxu0 %v1159_v27 }
  0x88   :  { %1078 = vmatprep.mubr.bf16.mxu0 %v1160_v28 }
  0x8f   :  { %1079 = vmatmul.mubr.bf16.gmra.mrb[28].mxu0 %v1161_v29 }
 0x12a   :  { %v1052_v33 = vpop.f32.mrb[0].mxu0 }
 0x12b   :  { %v341_v34 = vadd.f32 %v1052_v33, %v1357_v32  ;;  %v332_v35 = vpop.f32.mrb[1].mxu0 }
 0x12c   :  { %v333_v36 = vadd.f32 %v1357_v32, %v332_v35  ;;  %v1053_v37 = vpop.f32.mrb[2].mxu0 }
 0x12d   :  { %v344_v38 = vadd.f32 %v1053_v37, %v1357_v32  ;;  %v335_v39 = vpop.f32.mrb[3].mxu0  ;;  %v461_v41 = vmax.f32 %v341_v34, 0.0 }
 0x12e   :  { %v336_v40 = vadd.f32 %v1357_v32, %v335_v39  ;;  %v459_v43 = vmax.f32 %v333_v36, 0.0 }
 0x12f   :  { %v462_v42 = vmax.f32 %v344_v38, 0.0 }
 0x130   :  { %v460_v44 = vmax.f32 %v336_v40, 0.0 }
 0x131   :  { %v524_v45 = vpack.c.bf16 %v462_v42, %v461_v41 }
 0x132   :  { %v1056_v46 = vpop.f32.mrb[4].mxu0  ;;  %v523_v47 = vpack.c.bf16 %v460_v44, %v459_v43 }
 0x133   :  { %v357_v48 = vadd.f32 %v1056_v46, %v1357_v32  ;;  %v348_v49 = vpop.f32.mrb[5].mxu0 }
 0x134   :  { %v349_v50 = vadd.f32 %v1357_v32, %v348_v49  ;;  %v1057_v51 = vpop.f32.mrb[6].mxu0  ;;  %1098 = vmatprep.mubr.bf16.mxu1 %v523_v47 }
 0x135   :  { %v360_v52 = vadd.f32 %v1057_v51, %v1357_v32  ;;  %v351_v53 = vpop.f32.mrb[7].mxu0  ;;  %1099 = vmatmul.mubr.bf16.vlgmr.msra.gmra.mrb[0].mxu1 %v524_v45  ;;  %v465_v55 = vmax.f32 %v357_v48, 0.0 }
 0x136   :  { %v352_v54 = vadd.f32 %v1357_v32, %v351_v53  ;;  %v463_v57 = vmax.f32 %v349_v50, 0.0 }
 0x137   :  { %v466_v56 = vmax.f32 %v360_v52, 0.0 }
 0x138   :  { %v464_v58 = vmax.f32 %v352_v54, 0.0 }
 0x139   :  { %v526_v59 = vpack.c.bf16 %v466_v56, %v465_v55 }
 0x13a   :  { %v525_v60 = vpack.c.bf16 %v464_v58, %v463_v57  ;;  %v1060_v61 = vpop.f32.mrb[8].mxu0 }
 0x13b   :  { %v373_v62 = vadd.f32 %v1060_v61, %v1357_v32  ;;  %v364_v63 = vpop.f32.mrb[9].mxu0 }
 0x13c   :  { %v365_v0 = vadd.f32 %v1357_v32, %v364_v63  ;;  %v1061_v1 = vpop.f32.mrb[10].mxu0  ;;  %1102 = vmatprep.mubr.bf16.mxu1 %v525_v60 }
 0x13d   :  { %v376_v2 = vadd.f32 %v1061_v1, %v1357_v32  ;;  %v367_v3 = vpop.f32.mrb[11].mxu0  ;;  %1103 = vmatmul.mubr.bf16.gmra.mrb[4].mxu1 %v526_v59  ;;  %v469_v5 = vmax.f32 %v373_v62, 0.0 }
 0x13e   :  { %v368_v4 = vadd.f32 %v1357_v32, %v367_v3  ;;  %v467_v7 = vmax.f32 %v365_v0, 0.0 }
 0x13f   :  { %v470_v6 = vmax.f32 %v376_v2, 0.0 }
 0x140   :  { %v468_v8 = vmax.f32 %v368_v4, 0.0 }
 0x141   :  { %v528_v9 = vpack.c.bf16 %v470_v6, %v469_v5 }
 0x142   :  { %v527_v10 = vpack.c.bf16 %v468_v8, %v467_v7  ;;  %v1064_v11 = vpop.f32.mrb[12].mxu0 }
 0x143   :  { %v389_v12 = vadd.f32 %v1064_v11, %v1357_v32  ;;  %v380_v13 = vpop.f32.mrb[13].mxu0 }
 0x144   :  { %v381_v14 = vadd.f32 %v1357_v32, %v380_v13  ;;  %v1065_v15 = vpop.f32.mrb[14].mxu0  ;;  %1106 = vmatprep.mubr.bf16.mxu1 %v527_v10 }
 0x145   :  { %v392_v16 = vadd.f32 %v1065_v15, %v1357_v32  ;;  %v383_v17 = vpop.f32.mrb[15].mxu0  ;;  %1107 = vmatmul.mubr.bf16.gmra.mrb[8].mxu1 %v528_v9  ;;  %v473_v19 = vmax.f32 %v389_v12, 0.0 }
 0x146   :  { %v384_v18 = vadd.f32 %v1357_v32, %v383_v17  ;;  %v471_v21 = vmax.f32 %v381_v14, 0.0 }
 0x147   :  { %v474_v20 = vmax.f32 %v392_v16, 0.0 }
 0x148   :  { %v472_v22 = vmax.f32 %v384_v18, 0.0  ;;  %v1394_v18 = vld [vmem:[%s1444_s4] ss:$0 sm:$0xff]  ;;  %s1269_s4 = smov [#allocation9]  }
 0x149   :  { %v530_v23 = vpack.c.bf16 %v474_v20, %v473_v19  ;;  %s939_s6 = sshll.u32 %s1269_s4, 4  ;;  %s940_s6 = int_to_ptr.vmem [resolvable:$true] %s939_s6 }
 0x14a   :  { %v529_v24 = vpack.c.bf16 %v472_v22, %v471_v21  ;;  %v1068_v25 = vpop.f32.mrb[16].mxu0  ;;  %s1236_s7 = scalar_lea.vmem %s940_s6, 4096  ;;  %p1241_p11 = scmp.lt.s32.totalorder %s940_s6, %s940_s6 }
 0x14b   :  { %v405_v26 = vadd.f32 %v1068_v25, %v1357_v32  ;;  %v396_v27 = vpop.f32.mrb[17].mxu0  ;;  %p1237_p10 = scmp.ne.s32.totalorder %s940_s6, %s1236_s7  ;;  %p1242_p12 = scmp.lt.s32.totalorder %s1236_s7, %s1236_s7 }
 0x14c   :  { %v397_v28 = vadd.f32 %v1357_v32, %v396_v27  ;;  %v1069_v29 = vpop.f32.mrb[18].mxu0  ;;  %1110 = vmatprep.mubr.bf16.mxu1 %v529_v24 }
 0x14d   :  { %v408_v30 = vadd.f32 %v1069_v29, %v1357_v32  ;;  %v399_v31 = vpop.f32.mrb[19].mxu0  ;;  %1111 = vmatmul.mubr.bf16.gmra.mrb[12].mxu1 %v530_v23  ;;  %v477_v34 = vmax.f32 %v405_v26, 0.0  ;;  %p1243_p13 = por %p1242_p12, %p1241_p11 }
 0x14e   :  { %v400_v33 = vadd.f32 %v1357_v32, %v399_v31  ;;  %v475_v36 = vmax.f32 %v397_v28, 0.0 }
 0x14f   :  { %v478_v35 = vmax.f32 %v408_v30, 0.0  ;;  %p1244_p0 = pnand %p1243_p13, %p1237_p10 }
 0x150   :  { %v476_v37 = vmax.f32 %v400_v33, 0.0 }
 0x151   :  { %v532_v38 = vpack.c.bf16 %v478_v35, %v477_v34 }
 0x152   :  { %v531_v39 = vpack.c.bf16 %v476_v37, %v475_v36  ;;  %v1072_v40 = vpop.f32.mrb[20].mxu0 }
 0x153   :  { %v421_v41 = vadd.f32 %v1072_v40, %v1357_v32  ;;  %v412_v42 = vpop.f32.mrb[21].mxu0 }
 0x154   :  { %v413_v43 = vadd.f32 %v1357_v32, %v412_v42  ;;  %v1073_v44 = vpop.f32.mrb[22].mxu0  ;;  %1114 = vmatprep.mubr.bf16.mxu1 %v531_v39 }
 0x155   :  { %v424_v45 = vadd.f32 %v1073_v44, %v1357_v32  ;;  %v415_v46 = vpop.f32.mrb[23].mxu0  ;;  %1115 = vmatmul.mubr.bf16.gmra.mrb[16].mxu1 %v532_v38  ;;  %v481_v48 = vmax.f32 %v421_v41, 0.0 }
 0x156   :  { %v416_v47 = vadd.f32 %v1357_v32, %v415_v46  ;;  %v479_v50 = vmax.f32 %v413_v43, 0.0 }
 0x157   :  { %v482_v49 = vmax.f32 %v424_v45, 0.0 }
 0x158   :  { %v480_v51 = vmax.f32 %v416_v47, 0.0 }
 0x159   :  { %v534_v52 = vpack.c.bf16 %v482_v49, %v481_v48 }
 0x15a   :  { %v533_v53 = vpack.c.bf16 %v480_v51, %v479_v50  ;;  %v1076_v54 = vpop.f32.mrb[24].mxu0 }
 0x15b   :  { %v437_v55 = vadd.f32 %v1076_v54, %v1357_v32  ;;  %v428_v56 = vpop.f32.mrb[25].mxu0 }
 0x15c   :  { %v429_v57 = vadd.f32 %v1357_v32, %v428_v56  ;;  %v1077_v58 = vpop.f32.mrb[26].mxu0  ;;  %1118 = vmatprep.mubr.bf16.mxu1 %v533_v53 }
 0x15d   :  { %v440_v59 = vadd.f32 %v1077_v58, %v1357_v32  ;;  %v431_v60 = vpop.f32.mrb[27].mxu0  ;;  %1119 = vmatmul.mubr.bf16.gmra.mrb[20].mxu1 %v534_v52  ;;  %v485_v62 = vmax.f32 %v437_v55, 0.0 }
 0x15e   :  { %v432_v61 = vadd.f32 %v1357_v32, %v431_v60  ;;  %v483_v0 = vmax.f32 %v429_v57, 0.0 }
 0x15f   :  { %v486_v63 = vmax.f32 %v440_v59, 0.0 }
 0x160   :  { %v484_v1 = vmax.f32 %v432_v61, 0.0 }
 0x161   :  { %v536_v2 = vpack.c.bf16 %v486_v63, %v485_v62 }
 0x162   :  { %v535_v3 = vpack.c.bf16 %v484_v1, %v483_v0  ;;  %v1080_v4 = vpop.f32.mrb[28].mxu0 }
 0x163   :  { %v453_v5 = vadd.f32 %v1080_v4, %v1357_v32  ;;  %v444_v6 = vpop.f32.mrb[29].mxu0 }
 0x164   :  { %v445_v7 = vadd.f32 %v1357_v32, %v444_v6  ;;  %v1081_v8 = vpop.f32.mrb[30].mxu0  ;;  %1122 = vmatprep.mubr.bf16.mxu1 %v535_v3 }
 0x165   :  { %v456_v9 = vadd.f32 %v1081_v8, %v1357_v32  ;;  %v447_v10 = vpop.f32.mrb[31].mxu0  ;;  %1123 = vmatmul.mubr.bf16.gmra.mrb[24].mxu1 %v536_v2  ;;  %v489_v12 = vmax.f32 %v453_v5, 0.0 }
 0x166   :  { %v448_v11 = vadd.f32 %v1357_v32, %v447_v10  ;;  %v487_v14 = vmax.f32 %v445_v7, 0.0 }
 0x167   :  { %v490_v13 = vmax.f32 %v456_v9, 0.0 }
 0x168   :  { %v488_v15 = vmax.f32 %v448_v11, 0.0 }
 0x169   :  { %v538_v16 = vpack.c.bf16 %v490_v13, %v489_v12 }
 0x16a   :  { %v537_v17 = vpack.c.bf16 %v488_v15, %v487_v14 }
 0x16c   :  { %1126 = vmatprep.mubr.bf16.mxu1 %v537_v17 }
 0x16d   :  { %1127 = vmatmul.mubr.bf16.gmra.mrb[28].mxu1 %v538_v16 }
 0x208   :  { %v1100_v19 = vpop.f32.mrb[0].mxu1 }
 0x209   :  { %v872_v20 = vadd.f32 %v1100_v19, %v1394_v18  ;;  %v637_v21 = vpop.f32.mrb[1].mxu1 }
 0x20a   :  { %v870_v22 = vadd.f32 %v1394_v18, %v637_v21  ;;  %v1101_v32 = vpop.f32.mrb[2].mxu1 }
 0x20b   :  { %904 = vst [vmem:[#allocation9 + $0x10] sm:$0xff] %v872_v20  ;;  %v873_v23 = vadd.f32 %v1101_v32, %v1394_v18  ;;  %v640_v24 = vpop.f32.mrb[3].mxu1 }
 0x20c   :  { %902 = vst [vmem:[#allocation9] sm:$0xff] %v870_v22  ;;  %v871_v25 = vadd.f32 %v1394_v18, %v640_v24 }
 0x20d   :  { %905 = vst [vmem:[#allocation9 + $0x18] sm:$0xff] %v873_v23 }
 0x20e   :  { %903 = vst [vmem:[#allocation9 + $0x8] sm:$0xff] %v871_v25 }
 0x210   :  { %v1104_v26 = vpop.f32.mrb[4].mxu1 }
 0x211   :  { %v876_v27 = vadd.f32 %v1104_v26, %v1394_v18  ;;  %v653_v28 = vpop.f32.mrb[5].mxu1 }
 0x212   :  { %v874_v29 = vadd.f32 %v1394_v18, %v653_v28  ;;  %v1105_v30 = vpop.f32.mrb[6].mxu1 }
 0x213   :  { %908 = vst [vmem:[#allocation9 + $0x30] sm:$0xff] %v876_v27  ;;  %v877_v31 = vadd.f32 %v1105_v30, %v1394_v18  ;;  %v656_v33 = vpop.f32.mrb[7].mxu1 }
 0x214   :  { %906 = vst [vmem:[#allocation9 + $0x20] sm:$0xff] %v874_v29  ;;  %v875_v34 = vadd.f32 %v1394_v18, %v656_v33 }
 0x215   :  { %909 = vst [vmem:[#allocation9 + $0x38] sm:$0xff] %v877_v31 }
 0x216   :  { %907 = vst [vmem:[#allocation9 + $0x28] sm:$0xff] %v875_v34 }
 0x218   :  { %v1108_v35 = vpop.f32.mrb[8].mxu1 }
 0x219   :  { %v880_v36 = vadd.f32 %v1108_v35, %v1394_v18  ;;  %v669_v37 = vpop.f32.mrb[9].mxu1 }
 0x21a   :  { %v878_v38 = vadd.f32 %v1394_v18, %v669_v37  ;;  %v1109_v39 = vpop.f32.mrb[10].mxu1 }
 0x21b   :  { %912 = vst [vmem:[#allocation9 + $0x50] sm:$0xff] %v880_v36  ;;  %v881_v40 = vadd.f32 %v1109_v39, %v1394_v18  ;;  %v672_v41 = vpop.f32.mrb[11].mxu1 }
 0x21c   :  { %910 = vst [vmem:[#allocation9 + $0x40] sm:$0xff] %v878_v38  ;;  %v879_v42 = vadd.f32 %v1394_v18, %v672_v41 }
 0x21d   :  { %913 = vst [vmem:[#allocation9 + $0x58] sm:$0xff] %v881_v40 }
 0x21e   :  { %911 = vst [vmem:[#allocation9 + $0x48] sm:$0xff] %v879_v42 }
 0x220   :  { %v1112_v43 = vpop.f32.mrb[12].mxu1 }
 0x221   :  { %v884_v44 = vadd.f32 %v1112_v43, %v1394_v18  ;;  %v685_v45 = vpop.f32.mrb[13].mxu1 }
 0x222   :  { %v882_v46 = vadd.f32 %v1394_v18, %v685_v45  ;;  %v1113_v47 = vpop.f32.mrb[14].mxu1 }
 0x223   :  { %916 = vst [vmem:[#allocation9 + $0x70] sm:$0xff] %v884_v44  ;;  %v885_v48 = vadd.f32 %v1113_v47, %v1394_v18  ;;  %v688_v49 = vpop.f32.mrb[15].mxu1 }
 0x224   :  { %914 = vst [vmem:[#allocation9 + $0x60] sm:$0xff] %v882_v46  ;;  %v883_v50 = vadd.f32 %v1394_v18, %v688_v49 }
 0x225   :  { %917 = vst [vmem:[#allocation9 + $0x78] sm:$0xff] %v885_v48 }
 0x226   :  { %915 = vst [vmem:[#allocation9 + $0x68] sm:$0xff] %v883_v50 }
 0x228   :  { %v1116_v51 = vpop.f32.mrb[16].mxu1 }
 0x229   :  { %v888_v52 = vadd.f32 %v1116_v51, %v1394_v18  ;;  %v701_v53 = vpop.f32.mrb[17].mxu1 }
 0x22a   :  { %v886_v54 = vadd.f32 %v1394_v18, %v701_v53  ;;  %v1117_v55 = vpop.f32.mrb[18].mxu1 }
 0x22b   :  { %920 = vst [vmem:[#allocation9 + $0x90] sm:$0xff] %v888_v52  ;;  %v889_v56 = vadd.f32 %v1117_v55, %v1394_v18  ;;  %v704_v57 = vpop.f32.mrb[19].mxu1 }
 0x22c   :  { %918 = vst [vmem:[#allocation9 + $0x80] sm:$0xff] %v886_v54  ;;  %v887_v58 = vadd.f32 %v1394_v18, %v704_v57 }
 0x22d   :  { %921 = vst [vmem:[#allocation9 + $0x98] sm:$0xff] %v889_v56 }
 0x22e   :  { %919 = vst [vmem:[#allocation9 + $0x88] sm:$0xff] %v887_v58 }
 0x230   :  { %v1120_v59 = vpop.f32.mrb[20].mxu1 }
 0x231   :  { %v892_v60 = vadd.f32 %v1120_v59, %v1394_v18  ;;  %v717_v61 = vpop.f32.mrb[21].mxu1 }
 0x232   :  { %v890_v62 = vadd.f32 %v1394_v18, %v717_v61  ;;  %v1121_v63 = vpop.f32.mrb[22].mxu1 }
 0x233   :  { %924 = vst [vmem:[#allocation9 + $0xb0] sm:$0xff] %v892_v60  ;;  %v893_v0 = vadd.f32 %v1121_v63, %v1394_v18  ;;  %v720_v1 = vpop.f32.mrb[23].mxu1 }
 0x234   :  { %922 = vst [vmem:[#allocation9 + $0xa0] sm:$0xff] %v890_v62  ;;  %v891_v2 = vadd.f32 %v1394_v18, %v720_v1 }
 0x235   :  { %925 = vst [vmem:[#allocation9 + $0xb8] sm:$0xff] %v893_v0 }
 0x236   :  { %923 = vst [vmem:[#allocation9 + $0xa8] sm:$0xff] %v891_v2 }
 0x238   :  { %v1124_v3 = vpop.f32.mrb[24].mxu1 }
 0x239   :  { %v896_v4 = vadd.f32 %v1124_v3, %v1394_v18  ;;  %v733_v5 = vpop.f32.mrb[25].mxu1 }
 0x23a   :  { %v894_v6 = vadd.f32 %v1394_v18, %v733_v5  ;;  %v1125_v7 = vpop.f32.mrb[26].mxu1 }
 0x23b   :  { %928 = vst [vmem:[#allocation9 + $0xd0] sm:$0xff] %v896_v4  ;;  %v897_v8 = vadd.f32 %v1125_v7, %v1394_v18  ;;  %v736_v9 = vpop.f32.mrb[27].mxu1 }
 0x23c   :  { %926 = vst [vmem:[#allocation9 + $0xc0] sm:$0xff] %v894_v6  ;;  %v895_v10 = vadd.f32 %v1394_v18, %v736_v9 }
 0x23d   :  { %929 = vst [vmem:[#allocation9 + $0xd8] sm:$0xff] %v897_v8 }
 0x23e   :  { %927 = vst [vmem:[#allocation9 + $0xc8] sm:$0xff] %v895_v10 }
 0x240   :  { %v1128_v11 = vpop.f32.mrb[28].mxu1 }
 0x241   :  { %v900_v12 = vadd.f32 %v1128_v11, %v1394_v18  ;;  %v749_v13 = vpop.f32.mrb[29].mxu1 }
 0x242   :  { %v898_v14 = vadd.f32 %v1394_v18, %v749_v13  ;;  %v1129_v15 = vpop.f32.mrb[30].mxu1 }
 0x243   :  { %932 = vst [vmem:[#allocation9 + $0xf0] sm:$0xff] %v900_v12  ;;  %v901_v16 = vadd.f32 %v1129_v15, %v1394_v18  ;;  %v752_v17 = vpop.f32.mrb[31].mxu1 }
 0x244   :  { %930 = vst [vmem:[#allocation9 + $0xe0] sm:$0xff] %v898_v14  ;;  %v899_v19 = vadd.f32 %v1394_v18, %v752_v17 }
 0x245   :  { %933 = vst [vmem:[#allocation9 + $0xf8] sm:$0xff] %v901_v16 }
 0x246   :  { %931 = vst [vmem:[#allocation9 + $0xe8] sm:$0xff] %v899_v19 }
 0x247   :  { %1247 = shalt.err (!%p1244_p0)
}
 0x248   :  { %s1248_s10 = scalar_lea.hbm %s1445_s5, 4096 }
 0x249   :  { %p1249_p1 = scmp.ne.s32.totalorder %s1445_s5, %s1248_s10  ;;  %p1252_p2 = scmp.lt.u32.totalorder %s1248_s10, %s1445_s5 }
 0x24b   :  { %p1254_p3 = pnand %p1252_p2, %p1249_p1 }
 0x24d   :  { %1257 = shalt.err (!%p1254_p3)
}
 0x24e   :  { %s1270_s15 = smov 128   ;;  %s1271_s16 = smov 8  }
 0x24f   :  { %945 = dma.vmem_to_hbm [thread:$0]  %s940_s6, 4096, %s1445_s5, [#allocation5], %s1270_s15, %s1270_s15, %s1271_s16  }
 0x250   :  { %1262 = dma.done.wait [#allocation5], 4096  }
 0x251   :  { %1263 = vsyncadd [#allocation5], 4294963200 }
 0x252   :  { %949 = vsyncpa [#allocation4], 1 }
 0x253   :  { %950 = vsyncpa [#allocation7], 1 }
 0x254   :  { %951 = vsyncpa [#allocation5], 1 }

// kernel: tpu_custom_call.1
= control target key start
LH: loop header
LB: loop body
LE: loop exit
PB: predicated region body
PF: predicated region fallthrough
CT: control target
= control target key end

     0   :  { %10 = vsyncpa [#allocation4], 0  ;;  %s1440_s0 = inlined_call_operand.hbm [shape: bf16[256,128], index: 0, kind: input, shape index: {}]   ;;  %s1441_s1 = inlined_call_operand.hbm [shape: bf16[128,128], index: 1, kind: input, shape index: {}]   ;;  %s1442_s2 = inlined_call_operand.vmem [shape: f32[1,128], index: 2, kind: input, shape index: {}]   ;;  %s1443_s3 = inlined_call_operand.hbm [shape: bf16[128,128], index: 3, kind: input, shape index: {}]   ;;  %s1444_s4 = inlined_call_operand.vmem [shape: f32[1,128], index: 4, kind: input, shape index: {}]   ;;  %s1445_s5 = inlined_call_operand.hbm [shape: f32[256,128], index: 5, kind: output, shape index: {}]  }
   0x1   :  { %11 = vsyncpa [#allocation7], 0 }
   0x2   :  { %12 = vsyncpa [#allocation5], 0  ;;  %s1264_s18 = smov [#allocation6]   ;;  %s1265_s20 = smov [#allocation3]  }
   0x3   :  { %s30_s19 = sshll.u32 %s1264_s18, 4  ;;  %s18_s21 = sshll.u32 %s1265_s20, 4  ;;  %s31_s19 = int_to_ptr.vmem [resolvable:$true] %s30_s19  ;;  %s1302_s21 = int_to_ptr.vmem [resolvable:$true] %s18_s21 }
   0x4   :  { %s1170_s24 = scalar_lea.hbm %s1441_s1, 1024 }
   0x5   :  { %p1171_p0 = scmp.ne.s32.totalorder %s1441_s1, %s1170_s24  ;;  %p1174_p1 = scmp.lt.u32.totalorder %s1170_s24, %s1441_s1 }
   0x7   :  { %p1176_p2 = pnand %p1174_p1, %p1171_p0 }
   0x9   :  { %1179 = shalt.err (!%p1176_p2)
}
   0xa   :  { %s1180_s29 = scalar_lea.vmem %s31_s19, 1024  ;;  %p1185_p4 = scmp.lt.s32.totalorder %s31_s19, %s31_s19 }
   0xb   :  { %p1181_p3 = scmp.ne.s32.totalorder %s31_s19, %s1180_s29  ;;  %p1186_p5 = scmp.lt.s32.totalorder %s1180_s29, %s1180_s29 }
   0xd   :  { %p1187_p6 = por %p1186_p5, %p1185_p4 }
   0xf   :  { %p1188_p7 = pnand %p1187_p6, %p1181_p3 }
  0x11   :  { %1191 = shalt.err (!%p1188_p7)
}
  0x12   :  { %s1266_s30 = smov 64   ;;  %s1267_s6 = smov 4  }
  0x13   :  { %36 = dma.hbm_to_vmem [thread:$0]  %s1441_s1, 1024, %s31_s19, [#allocation7], %s1266_s30, %s1266_s30, %s1267_s6  }
  0x14   :  { %s1192_s11 = scalar_lea.hbm %s1440_s0, 2048 }
  0x15   :  { %p1193_p8 = scmp.ne.s32.totalorder %s1440_s0, %s1192_s11  ;;  %p1196_p9 = scmp.lt.u32.totalorder %s1192_s11, %s1440_s0 }
  0x17   :  { %p1198_p10 = pnand %p1196_p9, %p1193_p8 }
  0x19   :  { %1201 = shalt.err (!%p1198_p10)
}
  0x1a   :  { %s1202_s16 = scalar_lea.vmem %s1302_s21, 2048  ;;  %p1207_p12 = scmp.lt.s32.totalorder %s1302_s21, %s1302_s21 }
  0x1b   :  { %p1203_p11 = scmp.ne.s32.totalorder %s1302_s21, %s1202_s16  ;;  %p1208_p13 = scmp.lt.s32.totalorder %s1202_s16, %s1202_s16 }
  0x1d   :  { %p1209_p0 = por %p1208_p13, %p1207_p12 }
  0x1f   :  { %p1210_p1 = pnand %p1209_p0, %p1203_p11 }
  0x21   :  { %1213 = shalt.err (!%p1210_p1)
}
  0x22   :  { %24 = dma.hbm_to_vmem [thread:$0]  %s1440_s0, 2048, %s1302_s21, [#allocation4], %s1266_s30, %s1266_s30, %s1267_s6  }
  0x23   :  { %s1268_s18 = smov [#allocation8]   ;;  %s1214_s23 = scalar_lea.hbm %s1443_s3, 1024 }
  0x24   :  { %s44_s19 = sshll.u32 %s1268_s18, 4  ;;  %p1215_p2 = scmp.ne.s32.totalorder %s1443_s3, %s1214_s23  ;;  %s45_s19 = int_to_ptr.vmem [resolvable:$true] %s44_s19 }
  0x25   :  { %p1218_p3 = scmp.lt.u32.totalorder %s1214_s23, %s1443_s3 }
  0x27   :  { %p1220_p4 = pnand %p1218_p3, %p1215_p2 }
  0x29   :  { %1223 = shalt.err (!%p1220_p4)
}
  0x2a   :  { %s1224_s28 = scalar_lea.vmem %s45_s19, 1024  ;;  %p1229_p6 = scmp.lt.s32.totalorder %s45_s19, %s45_s19 }
  0x2b   :  { %p1225_p5 = scmp.ne.s32.totalorder %s45_s19, %s1224_s28  ;;  %p1230_p7 = scmp.lt.s32.totalorder %s1224_s28, %s1224_s28 }
  0x2d   :  { %p1231_p8 = por %p1230_p7, %p1229_p6 }
  0x2f   :  { %p1232_p9 = pnand %p1231_p8, %p1225_p5 }
  0x31   :  { %1235 = shalt.err (!%p1232_p9)
}
  0x32   :  { %50 = dma.hbm_to_vmem [thread:$0]  %s1443_s3, 1024, %s45_s19, [#allocation7], %s1266_s30, %s1266_s30, %s1267_s6  }
  0x33   :  { %1258 = dma.done.wait [#allocation4], 2048  }
  0x34   :  { %1259 = vsyncadd [#allocation4], 4294965248 }
  0x35   :  { %1260 = dma.done.wait [#allocation7], 2048  }
  0x36   :  { %1261 = vsyncadd [#allocation7], 4294965248  ;;  %v1138_v0 = vld [vmem:[#allocation6] sm:$0xff]   ;;  %v1139_v1 = vld [vmem:[#allocation6 + $0x8] sm:$0xff]  }
  0x37   :  { %1034 = vmatprep.subr.bf16.mxu0 %v1138_v0  ;;  %v1140_v2 = vld [vmem:[#allocation6 + $0x10] sm:$0xff]   ;;  %v1141_v3 = vld [vmem:[#allocation6 + $0x18] sm:$0xff]   ;;  %v1146_v4 = vld [vmem:[#allocation3] sm:$0xff]  }
  0x38   :  { %1035 = vmatpush3.bf16.msra.mxu0 %v1138_v0  ;;  %1050 = vmatprep.mubr.bf16.mxu0 %v1146_v4  ;;  %v1142_v5 = vld [vmem:[#allocation6 + $0x20] sm:$0xff]   ;;  %v1143_v6 = vld [vmem:[#allocation6 + $0x28] sm:$0xff]   ;;  %v1144_v7 = vld [vmem:[#allocation6 + $0x30] sm:$0xff]  }
  0x39   :  { %1036 = vmatprep.subr.bf16.mxu0 %v1139_v1  ;;  %v1145_v8 = vld [vmem:[#allocation6 + $0x38] sm:$0xff]   ;;  %v1162_v9 = vld [vmem:[#allocation8] sm:$0xff]   ;;  %v1163_v10 = vld [vmem:[#allocation8 + $0x8] sm:$0xff]  }
  0x3a   :  { %1082 = vmatprep.subr.bf16.mxu1 %v1162_v9  ;;  %v1164_v11 = vld [vmem:[#allocation8 + $0x10] sm:$0xff]   ;;  %v1147_v12 = vld [vmem:[#allocation3 + $0x8] sm:$0xff]   ;;  %v1165_v14 = vld [vmem:[#allocation8 + $0x18] sm:$0xff]  }
  0x3b   :  { %1083 = vmatpush3.bf16.msra.mxu1 %v1162_v9  ;;  %v1148_v13 = vld [vmem:[#allocation3 + $0x10] sm:$0xff]   ;;  %v1166_v15 = vld [vmem:[#allocation8 + $0x20] sm:$0xff]   ;;  %v1149_v16 = vld [vmem:[#allocation3 + $0x18] sm:$0xff]  }
  0x3c   :  { %1037 = vmatpush3.bf16.msra.mxu0 %v1139_v1  ;;  %1084 = vmatprep.subr.bf16.mxu1 %v1163_v10  ;;  %v1150_v17 = vld [vmem:[#allocation3 + $0x20] sm:$0xff]   ;;  %v1167_v18 = vld [vmem:[#allocation8 + $0x28] sm:$0xff]   ;;  %v1152_v20 = vld [vmem:[#allocation3 + $0x30] sm:$0xff]  }
  0x3d   :  { %1038 = vmatprep.subr.bf16.mxu0 %v1140_v2  ;;  %v1151_v19 = vld [vmem:[#allocation3 + $0x28] sm:$0xff]   ;;  %v1153_v21 = vld [vmem:[#allocation3 + $0x38] sm:$0xff]   ;;  %v1154_v22 = vld [vmem:[#allocation3 + $0x40] sm:$0xff]  }
  0x3e   :  { %v1155_v23 = vld [vmem:[#allocation3 + $0x48] sm:$0xff]   ;;  %v1156_v24 = vld [vmem:[#allocation3 + $0x50] sm:$0xff]   ;;  %v1157_v25 = vld [vmem:[#allocation3 + $0x58] sm:$0xff]  }
  0x3f   :  { %1085 = vmatpush3.bf16.msra.mxu1 %v1163_v10  ;;  %v1158_v26 = vld [vmem:[#allocation3 + $0x60] sm:$0xff]   ;;  %v1159_v27 = vld [vmem:[#allocation3 + $0x68] sm:$0xff]   ;;  %v1160_v28 = vld [vmem:[#allocation3 + $0x70] sm:$0xff]  }
  0x40   :  { %1039 = vmatpush3.bf16.msra.mxu0 %v1140_v2  ;;  %1086 = vmatprep.subr.bf16.mxu1 %v1164_v11  ;;  %v1161_v29 = vld [vmem:[#allocation3 + $0x78] sm:$0xff]   ;;  %v1168_v30 = vld [vmem:[#allocation8 + $0x30] sm:$0xff]   ;;  %v1357_v32 = vld [vmem:[%s1442_s2] ss:$0 sm:$0xff] }
  0x41   :  { %1040 = vmatprep.subr.bf16.mxu0 %v1141_v3  ;;  %v1169_v31 = vld [vmem:[#allocation8 + $0x38] sm:$0xff]  }
  0x43   :  { %1087 = vmatpush3.bf16.msra.mxu1 %v1164_v11 }
  0x44   :  { %1041 = vmatpush3.bf16.msra.mxu0 %v1141_v3  ;;  %1088 = vmatprep.subr.bf16.mxu1 %v1165_v14 }
  0x45   :  { %1042 = vmatprep.subr.bf16.mxu0 %v1142_v5 }
  0x47   :  { %1089 = vmatpush3.bf16.msra.mxu1 %v1165_v14 }
  0x48   :  { %1043 = vmatpush3.bf16.msra.mxu0 %v1142_v5  ;;  %1090 = vmatprep.subr.bf16.mxu1 %v1166_v15 }
  0x49   :  { %1044 = vmatprep.subr.bf16.mxu0 %v1143_v6 }
  0x4b   :  { %1091 = vmatpush3.bf16.msra.mxu1 %v1166_v15 }
  0x4c   :  { %1045 = vmatpush3.bf16.msra.mxu0 %v1143_v6  ;;  %1092 = vmatprep.subr.bf16.mxu1 %v1167_v18 }
  0x4d   :  { %1046 = vmatprep.subr.bf16.mxu0 %v1144_v7 }
  0x4f   :  { %1093 = vmatpush3.bf16.msra.mxu1 %v1167_v18 }
  0x50   :  { %1047 = vmatpush3.bf16.msra.mxu0 %v1144_v7  ;;  %1094 = vmatprep.subr.bf16.mxu1 %v1168_v30 }
  0x51   :  { %1048 = vmatprep.subr.bf16.mxu0 %v1145_v8 }
  0x53   :  { %1095 = vmatpush3.bf16.msra.mxu1 %v1168_v30 }
  0x54   :  { %1049 = vmatpush3.bf16.msra.mxu0 %v1145_v8  ;;  %1096 = vmatprep.subr.bf16.mxu1 %v1169_v31 }
  0x57   :  { %1051 = vmatmul.mubr.bf16.vlgmr.msra.gmra.mrb[0].mxu0 %v1147_v12  ;;  %1097 = vmatpush3.bf16.msra.mxu1 %v1169_v31 }
  0x58   :  { %1054 = vmatprep.mubr.bf16.mxu0 %v1148_v13 }
  0x5f   :  { %1055 = vmatmul.mubr.bf16.gmra.mrb[4].mxu0 %v1149_v16 }
  0x60   :  { %1058 = vmatprep.mubr.bf16.mxu0 %v1150_v17 }
  0x67   :  { %1059 = vmatmul.mubr.bf16.gmra.mrb[8].mxu0 %v1151_v19 }
  0x68   :  { %1062 = vmatprep.mubr.bf16.mxu0 %v1152_v20 }
  0x6f   :  { %1063 = vmatmul.mubr.bf16.gmra.mrb[12].mxu0 %v1153_v21 }
  0x70   :  { %1066 = vmatprep.mubr.bf16.mxu0 %v1154_v22 }
  0x77   :  { %1067 = vmatmul.mubr.bf16.gmra.mrb[16].mxu0 %v1155_v23 }
  0x78   :  { %1070 = vmatprep.mubr.bf16.mxu0 %v1156_v24 }
  0x7f   :  { %1071 = vmatmul.mubr.bf16.gmra.mrb[20].mxu0 %v1157_v25 }
  0x80   :  { %1074 = vmatprep.mubr.bf16.mxu0 %v1158_v26 }
  0x87   :  { %1075 = vmatmul.mubr.bf16.gmra.mrb[24].mxu0 %v1159_v27 }
  0x88   :  { %1078 = vmatprep.mubr.bf16.mxu0 %v1160_v28 }
  0x8f   :  { %1079 = vmatmul.mubr.bf16.gmra.mrb[28].mxu0 %v1161_v29 }
 0x12a   :  { %v1052_v33 = vpop.f32.mrb[0].mxu0 }
 0x12b   :  { %v341_v34 = vadd.f32 %v1052_v33, %v1357_v32  ;;  %v332_v35 = vpop.f32.mrb[1].mxu0 }
 0x12c   :  { %v333_v36 = vadd.f32 %v1357_v32, %v332_v35  ;;  %v1053_v37 = vpop.f32.mrb[2].mxu0 }
 0x12d   :  { %v344_v38 = vadd.f32 %v1053_v37, %v1357_v32  ;;  %v335_v39 = vpop.f32.mrb[3].mxu0  ;;  %v461_v41 = vmax.f32 %v341_v34, 0.0 }
 0x12e   :  { %v336_v40 = vadd.f32 %v1357_v32, %v335_v39  ;;  %v459_v43 = vmax.f32 %v333_v36, 0.0 }
 0x12f   :  { %v462_v42 = vmax.f32 %v344_v38, 0.0 }
 0x130   :  { %v460_v44 = vmax.f32 %v336_v40, 0.0 }
 0x131   :  { %v524_v45 = vpack.c.bf16 %v462_v42, %v461_v41 }
 0x132   :  { %v1056_v46 = vpop.f32.mrb[4].mxu0  ;;  %v523_v47 = vpack.c.bf16 %v460_v44, %v459_v43 }
 0x133   :  { %v357_v48 = vadd.f32 %v1056_v46, %v1357_v32  ;;  %v348_v49 = vpop.f32.mrb[5].mxu0 }
 0x134   :  { %v349_v50 = vadd.f32 %v1357_v32, %v348_v49  ;;  %v1057_v51 = vpop.f32.mrb[6].mxu0  ;;  %1098 = vmatprep.mubr.bf16.mxu1 %v523_v47 }
 0x135   :  { %v360_v52 = vadd.f32 %v1057_v51, %v1357_v32  ;;  %v351_v53 = vpop.f32.mrb[7].mxu0  ;;  %1099 = vmatmul.mubr.bf16.vlgmr.msra.gmra.mrb[0].mxu1 %v524_v45  ;;  %v465_v55 = vmax.f32 %v357_v48, 0.0 }
 0x136   :  { %v352_v54 = vadd.f32 %v1357_v32, %v351_v53  ;;  %v463_v57 = vmax.f32 %v349_v50, 0.0 }
 0x137   :  { %v466_v56 = vmax.f32 %v360_v52, 0.0 }
 0x138   :  { %v464_v58 = vmax.f32 %v352_v54, 0.0 }
 0x139   :  { %v526_v59 = vpack.c.bf16 %v466_v56, %v465_v55 }
 0x13a   :  { %v525_v60 = vpack.c.bf16 %v464_v58, %v463_v57  ;;  %v1060_v61 = vpop.f32.mrb[8].mxu0 }
 0x13b   :  { %v373_v62 = vadd.f32 %v1060_v61, %v1357_v32  ;;  %v364_v63 = vpop.f32.mrb[9].mxu0 }
 0x13c   :  { %v365_v0 = vadd.f32 %v1357_v32, %v364_v63  ;;  %v1061_v1 = vpop.f32.mrb[10].mxu0  ;;  %1102 = vmatprep.mubr.bf16.mxu1 %v525_v60 }
 0x13d   :  { %v376_v2 = vadd.f32 %v1061_v1, %v1357_v32  ;;  %v367_v3 = vpop.f32.mrb[11].mxu0  ;;  %1103 = vmatmul.mubr.bf16.gmra.mrb[4].mxu1 %v526_v59  ;;  %v469_v5 = vmax.f32 %v373_v62, 0.0 }
 0x13e   :  { %v368_v4 = vadd.f32 %v1357_v32, %v367_v3  ;;  %v467_v7 = vmax.f32 %v365_v0, 0.0 }
 0x13f   :  { %v470_v6 = vmax.f32 %v376_v2, 0.0 }
 0x140   :  { %v468_v8 = vmax.f32 %v368_v4, 0.0 }
 0x141   :  { %v528_v9 = vpack.c.bf16 %v470_v6, %v469_v5 }
 0x142   :  { %v527_v10 = vpack.c.bf16 %v468_v8, %v467_v7  ;;  %v1064_v11 = vpop.f32.mrb[12].mxu0 }
 0x143   :  { %v389_v12 = vadd.f32 %v1064_v11, %v1357_v32  ;;  %v380_v13 = vpop.f32.mrb[13].mxu0 }
 0x144   :  { %v381_v14 = vadd.f32 %v1357_v32, %v380_v13  ;;  %v1065_v15 = vpop.f32.mrb[14].mxu0  ;;  %1106 = vmatprep.mubr.bf16.mxu1 %v527_v10 }
 0x145   :  { %v392_v16 = vadd.f32 %v1065_v15, %v1357_v32  ;;  %v383_v17 = vpop.f32.mrb[15].mxu0  ;;  %1107 = vmatmul.mubr.bf16.gmra.mrb[8].mxu1 %v528_v9  ;;  %v473_v19 = vmax.f32 %v389_v12, 0.0 }
 0x146   :  { %v384_v18 = vadd.f32 %v1357_v32, %v383_v17  ;;  %v471_v21 = vmax.f32 %v381_v14, 0.0 }
 0x147   :  { %v474_v20 = vmax.f32 %v392_v16, 0.0 }
 0x148   :  { %v472_v22 = vmax.f32 %v384_v18, 0.0  ;;  %v1394_v18 = vld [vmem:[%s1444_s4] ss:$0 sm:$0xff]  ;;  %s1269_s4 = smov [#allocation9]  }
 0x149   :  { %v530_v23 = vpack.c.bf16 %v474_v20, %v473_v19  ;;  %s939_s6 = sshll.u32 %s1269_s4, 4  ;;  %s940_s6 = int_to_ptr.vmem [resolvable:$true] %s939_s6 }
 0x14a   :  { %v529_v24 = vpack.c.bf16 %v472_v22, %v471_v21  ;;  %v1068_v25 = vpop.f32.mrb[16].mxu0  ;;  %s1236_s7 = scalar_lea.vmem %s940_s6, 4096  ;;  %p1241_p11 = scmp.lt.s32.totalorder %s940_s6, %s940_s6 }
 0x14b   :  { %v405_v26 = vadd.f32 %v1068_v25, %v1357_v32  ;;  %v396_v27 = vpop.f32.mrb[17].mxu0  ;;  %p1237_p10 = scmp.ne.s32.totalorder %s940_s6, %s1236_s7  ;;  %p1242_p12 = scmp.lt.s32.totalorder %s1236_s7, %s1236_s7 }
 0x14c   :  { %v397_v28 = vadd.f32 %v1357_v32, %v396_v27  ;;  %v1069_v29 = vpop.f32.mrb[18].mxu0  ;;  %1110 = vmatprep.mubr.bf16.mxu1 %v529_v24 }
 0x14d   :  { %v408_v30 = vadd.f32 %v1069_v29, %v1357_v32  ;;  %v399_v31 = vpop.f32.mrb[19].mxu0  ;;  %1111 = vmatmul.mubr.bf16.gmra.mrb[12].mxu1 %v530_v23  ;;  %v477_v34 = vmax.f32 %v405_v26, 0.0  ;;  %p1243_p13 = por %p1242_p12, %p1241_p11 }
 0x14e   :  { %v400_v33 = vadd.f32 %v1357_v32, %v399_v31  ;;  %v475_v36 = vmax.f32 %v397_v28, 0.0 }
 0x14f   :  { %v478_v35 = vmax.f32 %v408_v30, 0.0  ;;  %p1244_p0 = pnand %p1243_p13, %p1237_p10 }
 0x150   :  { %v476_v37 = vmax.f32 %v400_v33, 0.0 }
 0x151   :  { %v532_v38 = vpack.c.bf16 %v478_v35, %v477_v34 }
 0x152   :  { %v531_v39 = vpack.c.bf16 %v476_v37, %v475_v36  ;;  %v1072_v40 = vpop.f32.mrb[20].mxu0 }
 0x153   :  { %v421_v41 = vadd.f32 %v1072_v40, %v1357_v32  ;;  %v412_v42 = vpop.f32.mrb[21].mxu0 }
 0x154   :  { %v413_v43 = vadd.f32 %v1357_v32, %v412_v42  ;;  %v1073_v44 = vpop.f32.mrb[22].mxu0  ;;  %1114 = vmatprep.mubr.bf16.mxu1 %v531_v39 }
 0x155   :  { %v424_v45 = vadd.f32 %v1073_v44, %v1357_v32  ;;  %v415_v46 = vpop.f32.mrb[23].mxu0  ;;  %1115 = vmatmul.mubr.bf16.gmra.mrb[16].mxu1 %v532_v38  ;;  %v481_v48 = vmax.f32 %v421_v41, 0.0 }
 0x156   :  { %v416_v47 = vadd.f32 %v1357_v32, %v415_v46  ;;  %v479_v50 = vmax.f32 %v413_v43, 0.0 }
 0x157   :  { %v482_v49 = vmax.f32 %v424_v45, 0.0 }
 0x158   :  { %v480_v51 = vmax.f32 %v416_v47, 0.0 }
 0x159   :  { %v534_v52 = vpack.c.bf16 %v482_v49, %v481_v48 }
 0x15a   :  { %v533_v53 = vpack.c.bf16 %v480_v51, %v479_v50  ;;  %v1076_v54 = vpop.f32.mrb[24].mxu0 }
 0x15b   :  { %v437_v55 = vadd.f32 %v1076_v54, %v1357_v32  ;;  %v428_v56 = vpop.f32.mrb[25].mxu0 }
 0x15c   :  { %v429_v57 = vadd.f32 %v1357_v32, %v428_v56  ;;  %v1077_v58 = vpop.f32.mrb[26].mxu0  ;;  %1118 = vmatprep.mubr.bf16.mxu1 %v533_v53 }
 0x15d   :  { %v440_v59 = vadd.f32 %v1077_v58, %v1357_v32  ;;  %v431_v60 = vpop.f32.mrb[27].mxu0  ;;  %1119 = vmatmul.mubr.bf16.gmra.mrb[20].mxu1 %v534_v52  ;;  %v485_v62 = vmax.f32 %v437_v55, 0.0 }
 0x15e   :  { %v432_v61 = vadd.f32 %v1357_v32, %v431_v60  ;;  %v483_v0 = vmax.f32 %v429_v57, 0.0 }
 0x15f   :  { %v486_v63 = vmax.f32 %v440_v59, 0.0 }
 0x160   :  { %v484_v1 = vmax.f32 %v432_v61, 0.0 }
 0x161   :  { %v536_v2 = vpack.c.bf16 %v486_v63, %v485_v62 }
 0x162   :  { %v535_v3 = vpack.c.bf16 %v484_v1, %v483_v0  ;;  %v1080_v4 = vpop.f32.mrb[28].mxu0 }
 0x163   :  { %v453_v5 = vadd.f32 %v1080_v4, %v1357_v32  ;;  %v444_v6 = vpop.f32.mrb[29].mxu0 }
 0x164   :  { %v445_v7 = vadd.f32 %v1357_v32, %v444_v6  ;;  %v1081_v8 = vpop.f32.mrb[30].mxu0  ;;  %1122 = vmatprep.mubr.bf16.mxu1 %v535_v3 }
 0x165   :  { %v456_v9 = vadd.f32 %v1081_v8, %v1357_v32  ;;  %v447_v10 = vpop.f32.mrb[31].mxu0  ;;  %1123 = vmatmul.mubr.bf16.gmra.mrb[24].mxu1 %v536_v2  ;;  %v489_v12 = vmax.f32 %v453_v5, 0.0 }
 0x166   :  { %v448_v11 = vadd.f32 %v1357_v32, %v447_v10  ;;  %v487_v14 = vmax.f32 %v445_v7, 0.0 }
 0x167   :  { %v490_v13 = vmax.f32 %v456_v9, 0.0 }
 0x168   :  { %v488_v15 = vmax.f32 %v448_v11, 0.0 }
 0x169   :  { %v538_v16 = vpack.c.bf16 %v490_v13, %v489_v12 }
 0x16a   :  { %v537_v17 = vpack.c.bf16 %v488_v15, %v487_v14 }
 0x16c   :  { %1126 = vmatprep.mubr.bf16.mxu1 %v537_v17 }
 0x16d   :  { %1127 = vmatmul.mubr.bf16.gmra.mrb[28].mxu1 %v538_v16 }
 0x208   :  { %v1100_v19 = vpop.f32.mrb[0].mxu1 }
 0x209   :  { %v872_v20 = vadd.f32 %v1100_v19, %v1394_v18  ;;  %v637_v21 = vpop.f32.mrb[1].mxu1 }
 0x20a   :  { %v870_v22 = vadd.f32 %v1394_v18, %v637_v21  ;;  %v1101_v32 = vpop.f32.mrb[2].mxu1 }
 0x20b   :  { %904 = vst [vmem:[#allocation9 + $0x10] sm:$0xff] %v872_v20  ;;  %v873_v23 = vadd.f32 %v1101_v32, %v1394_v18  ;;  %v640_v24 = vpop.f32.mrb[3].mxu1 }
 0x20c   :  { %902 = vst [vmem:[#allocation9] sm:$0xff] %v870_v22  ;;  %v871_v25 = vadd.f32 %v1394_v18, %v640_v24 }
 0x20d   :  { %905 = vst [vmem:[#allocation9 + $0x18] sm:$0xff] %v873_v23 }
 0x20e   :  { %903 = vst [vmem:[#allocation9 + $0x8] sm:$0xff] %v871_v25 }
 0x210   :  { %v1104_v26 = vpop.f32.mrb[4].mxu1 }
 0x211   :  { %v876_v27 = vadd.f32 %v1104_v26, %v1394_v18  ;;  %v653_v28 = vpop.f32.mrb[5].mxu1 }
 0x212   :  { %v874_v29 = vadd.f32 %v1394_v18, %v653_v28  ;;  %v1105_v30 = vpop.f32.mrb[6].mxu1 }
 0x213   :  { %908 = vst [vmem:[#allocation9 + $0x30] sm:$0xff] %v876_v27  ;;  %v877_v31 = vadd.f32 %v1105_v30, %v1394_v18  ;;  %v656_v33 = vpop.f32.mrb[7].mxu1 }
 0x214   :  { %906 = vst [vmem:[#allocation9 + $0x20] sm:$0xff] %v874_v29  ;;  %v875_v34 = vadd.f32 %v1394_v18, %v656_v33 }
 0x215   :  { %909 = vst [vmem:[#allocation9 + $0x38] sm:$0xff] %v877_v31 }
 0x216   :  { %907 = vst [vmem:[#allocation9 + $0x28] sm:$0xff] %v875_v34 }
 0x218   :  { %v1108_v35 = vpop.f32.mrb[8].mxu1 }
 0x219   :  { %v880_v36 = vadd.f32 %v1108_v35, %v1394_v18  ;;  %v669_v37 = vpop.f32.mrb[9].mxu1 }
 0x21a   :  { %v878_v38 = vadd.f32 %v1394_v18, %v669_v37  ;;  %v1109_v39 = vpop.f32.mrb[10].mxu1 }
 0x21b   :  { %912 = vst [vmem:[#allocation9 + $0x50] sm:$0xff] %v880_v36  ;;  %v881_v40 = vadd.f32 %v1109_v39, %v1394_v18  ;;  %v672_v41 = vpop.f32.mrb[11].mxu1 }
 0x21c   :  { %910 = vst [vmem:[#allocation9 + $0x40] sm:$0xff] %v878_v38  ;;  %v879_v42 = vadd.f32 %v1394_v18, %v672_v41 }
 0x21d   :  { %913 = vst [vmem:[#allocation9 + $0x58] sm:$0xff] %v881_v40 }
 0x21e   :  { %911 = vst [vmem:[#allocation9 + $0x48] sm:$0xff] %v879_v42 }
 0x220   :  { %v1112_v43 = vpop.f32.mrb[12].mxu1 }
 0x221   :  { %v884_v44 = vadd.f32 %v1112_v43, %v1394_v18  ;;  %v685_v45 = vpop.f32.mrb[13].mxu1 }
 0x222   :  { %v882_v46 = vadd.f32 %v1394_v18, %v685_v45  ;;  %v1113_v47 = vpop.f32.mrb[14].mxu1 }
 0x223   :  { %916 = vst [vmem:[#allocation9 + $0x70] sm:$0xff] %v884_v44  ;;  %v885_v48 = vadd.f32 %v1113_v47, %v1394_v18  ;;  %v688_v49 = vpop.f32.mrb[15].mxu1 }
 0x224   :  { %914 = vst [vmem:[#allocation9 + $0x60] sm:$0xff] %v882_v46  ;;  %v883_v50 = vadd.f32 %v1394_v18, %v688_v49 }
 0x225   :  { %917 = vst [vmem:[#allocation9 + $0x78] sm:$0xff] %v885_v48 }
 0x226   :  { %915 = vst [vmem:[#allocation9 + $0x68] sm:$0xff] %v883_v50 }
 0x228   :  { %v1116_v51 = vpop.f32.mrb[16].mxu1 }
 0x229   :  { %v888_v52 = vadd.f32 %v1116_v51, %v1394_v18  ;;  %v701_v53 = vpop.f32.mrb[17].mxu1 }
 0x22a   :  { %v886_v54 = vadd.f32 %v1394_v18, %v701_v53  ;;  %v1117_v55 = vpop.f32.mrb[18].mxu1 }
 0x22b   :  { %920 = vst [vmem:[#allocation9 + $0x90] sm:$0xff] %v888_v52  ;;  %v889_v56 = vadd.f32 %v1117_v55, %v1394_v18  ;;  %v704_v57 = vpop.f32.mrb[19].mxu1 }
 0x22c   :  { %918 = vst [vmem:[#allocation9 + $0x80] sm:$0xff] %v886_v54  ;;  %v887_v58 = vadd.f32 %v1394_v18, %v704_v57 }
 0x22d   :  { %921 = vst [vmem:[#allocation9 + $0x98] sm:$0xff] %v889_v56 }
 0x22e   :  { %919 = vst [vmem:[#allocation9 + $0x88] sm:$0xff] %v887_v58 }
 0x230   :  { %v1120_v59 = vpop.f32.mrb[20].mxu1 }
 0x231   :  { %v892_v60 = vadd.f32 %v1120_v59, %v1394_v18  ;;  %v717_v61 = vpop.f32.mrb[21].mxu1 }
 0x232   :  { %v890_v62 = vadd.f32 %v1394_v18, %v717_v61  ;;  %v1121_v63 = vpop.f32.mrb[22].mxu1 }
 0x233   :  { %924 = vst [vmem:[#allocation9 + $0xb0] sm:$0xff] %v892_v60  ;;  %v893_v0 = vadd.f32 %v1121_v63, %v1394_v18  ;;  %v720_v1 = vpop.f32.mrb[23].mxu1 }
 0x234   :  { %922 = vst [vmem:[#allocation9 + $0xa0] sm:$0xff] %v890_v62  ;;  %v891_v2 = vadd.f32 %v1394_v18, %v720_v1 }
 0x235   :  { %925 = vst [vmem:[#allocation9 + $0xb8] sm:$0xff] %v893_v0 }
 0x236   :  { %923 = vst [vmem:[#allocation9 + $0xa8] sm:$0xff] %v891_v2 }
 0x238   :  { %v1124_v3 = vpop.f32.mrb[24].mxu1 }
 0x239   :  { %v896_v4 = vadd.f32 %v1124_v3, %v1394_v18  ;;  %v733_v5 = vpop.f32.mrb[25].mxu1 }
 0x23a   :  { %v894_v6 = vadd.f32 %v1394_v18, %v733_v5  ;;  %v1125_v7 = vpop.f32.mrb[26].mxu1 }
 0x23b   :  { %928 = vst [vmem:[#allocation9 + $0xd0] sm:$0xff] %v896_v4  ;;  %v897_v8 = vadd.f32 %v1125_v7, %v1394_v18  ;;  %v736_v9 = vpop.f32.mrb[27].mxu1 }
 0x23c   :  { %926 = vst [vmem:[#allocation9 + $0xc0] sm:$0xff] %v894_v6  ;;  %v895_v10 = vadd.f32 %v1394_v18, %v736_v9 }
 0x23d   :  { %929 = vst [vmem:[#allocation9 + $0xd8] sm:$0xff] %v897_v8 }
 0x23e   :  { %927 = vst [vmem:[#allocation9 + $0xc8] sm:$0xff] %v895_v10 }
 0x240   :  { %v1128_v11 = vpop.f32.mrb[28].mxu1 }
 0x241   :  { %v900_v12 = vadd.f32 %v1128_v11, %v1394_v18  ;;  %v749_v13 = vpop.f32.mrb[29].mxu1 }
 0x242   :  { %v898_v14 = vadd.f32 %v1394_v18, %v749_v13  ;;  %v1129_v15 = vpop.f32.mrb[30].mxu1 }
 0x243   :  { %932 = vst [vmem:[#allocation9 + $0xf0] sm:$0xff] %v900_v12  ;;  %v901_v16 = vadd.f32 %v1129_v15, %v1394_v18  ;;  %v752_v17 = vpop.f32.mrb[31].mxu1 }
 0x244   :  { %930 = vst [vmem:[#allocation9 + $0xe0] sm:$0xff] %v898_v14  ;;  %v899_v19 = vadd.f32 %v1394_v18, %v752_v17 }
 0x245   :  { %933 = vst [vmem:[#allocation9 + $0xf8] sm:$0xff] %v901_v16 }
 0x246   :  { %931 = vst [vmem:[#allocation9 + $0xe8] sm:$0xff] %v899_v19 }
 0x247   :  { %1247 = shalt.err (!%p1244_p0)
}
 0x248   :  { %s1248_s10 = scalar_lea.hbm %s1445_s5, 4096 }
 0x249   :  { %p1249_p1 = scmp.ne.s32.totalorder %s1445_s5, %s1248_s10  ;;  %p1252_p2 = scmp.lt.u32.totalorder %s1248_s10, %s1445_s5 }
 0x24b   :  { %p1254_p3 = pnand %p1252_p2, %p1249_p1 }
 0x24d   :  { %1257 = shalt.err (!%p1254_p3)
}
 0x24e   :  { %s1270_s15 = smov 128   ;;  %s1271_s16 = smov 8  }
 0x24f   :  { %945 = dma.vmem_to_hbm [thread:$0]  %s940_s6, 4096, %s1445_s5, [#allocation5], %s1270_s15, %s1270_s15, %s1271_s16  }
 0x250   :  { %1262 = dma.done.wait [#allocation5], 4096  }
 0x251   :  { %1263 = vsyncadd [#allocation5], 4294963200 }
 0x252   :  { %949 = vsyncpa [#allocation4], 1 }
 0x253   :  { %950 = vsyncpa [#allocation7], 1 }
 0x254   :  { %951 = vsyncpa [#allocation5], 1 }

</bundles_post_ra>
